<compile_context>
chip_gen: v7x
topology: tpu7x:2x2x1
jax: 0.10.0
libtpu: 0.0.40
codegen_flags: <defaults>
</compile_context>

<pallas_src>
import functools

import numpy as np
import jax
import jax.numpy as jnp
from jax.experimental import pallas as pl
from jax.experimental.pallas import tpu as pltpu

IN_FEATURES = 32            # len(train_data[0][1]) unknown at authoring time -> fixed value
HIDDEN_DIMS = [128, 256, 512, 256, 128]
LAYER_DIMS = [IN_FEATURES] + HIDDEN_DIMS
DEFAULT_BATCH_TILE = 1024   # main tuning knob; sweep 512/1024/2048 on big batches

_MATMUL_FLOPS_PER_ROW = 2 * sum(LAYER_DIMS[i] * LAYER_DIMS[i + 1] for i in range(5))
_PARAM_BYTES = (sum(LAYER_DIMS[i] * LAYER_DIMS[i + 1] for i in range(5)) * 2  # bf16 W
                + sum(HIDDEN_DIMS) * 4)                                        # f32 b


def fighter_net_kernel(x_ref,
                       w1_ref, b1_ref,
                       w2_ref, b2_ref,
                       w3_ref, b3_ref,
                       w4_ref, b4_ref,
                       w5_ref, b5_ref,
                       o_ref):
    """One batch tile of the fused 5-layer MLP (dropout p=0 -> identity)."""

    def layer(h, w_ref, b_ref, out_dtype):
        # bf16 x bf16 matmul with f32 accumulation on the MXU; bias + ReLU in f32.
        y = jnp.dot(h, w_ref[...], preferred_element_type=jnp.float32)
        y = jnp.maximum(y + b_ref[...], 0.0)
        return y.astype(out_dtype)

    h = x_ref[...]                                            # (tile, 32) bf16
    h = layer(h, w1_ref, b1_ref, jnp.bfloat16)
    h = layer(h, w2_ref, b2_ref, jnp.bfloat16)
    h = layer(h, w3_ref, b3_ref, jnp.bfloat16)
    h = layer(h, w4_ref, b4_ref, jnp.bfloat16)
    h = layer(h, w5_ref, b5_ref, o_ref.dtype)                 # cast only on final store
    o_ref[...] = h


def _round_up(x, m):
    return ((x + m - 1) // m) * m


def _cdiv(a, b):
    return (a + b - 1) // b


def _choose_batch_tile(batch, requested):
    """Pick a batch tile: bounded by `requested`, sublane (8) aligned, minimal padding
    for small batches, and >=2 tiles of >=256 rows for large batches (so the 'parallel'
    grid axis keeps both v7x TensorCores busy and the MXU stays full)."""
    requested = max(8, _round_up(min(int(requested), 4096), 8))
    if batch <= 256:
        return min(_round_up(batch, 8), requested)
    return min(requested, max(256, _round_up(_cdiv(batch, 2), 256)))


def prepare_params(params):
    """One-time parameter prep: W -> bf16 (in, out); b -> f32 (1, out).  Do this once
    outside the per-step forward so no cast/pad XLA ops run per call."""
    flat = []
    for (w, b) in params:
        flat.append(jnp.asarray(w, jnp.bfloat16))
        flat.append(jnp.asarray(b, jnp.float32).reshape(1, -1))
    return tuple(flat)


@functools.partial(jax.jit, static_argnames=("batch_tile", "out_dtype"))
def fighter_net_forward(x, flat_params, *, batch_tile=DEFAULT_BATCH_TILE,
                        out_dtype=jnp.float32):
    """x: (B, IN_FEATURES) f32.  flat_params: output of prepare_params()."""
    B, F = x.shape
    assert F == IN_FEATURES, f"expected {IN_FEATURES} input features, got {F}"

    tile = _choose_batch_tile(B, batch_tile)
    pad_b = (-B) % tile
    Bp = B + pad_b
    n_tiles = Bp // tile

    # Input streams as (B, 32) bf16 — no 32->128 padding pass, 4x less input traffic.
    x_bf = x.astype(jnp.bfloat16)
    if pad_b:
        x_bf = jnp.pad(x_bf, ((0, pad_b), (0, 0)))

    # Weights/biases: full array as their block with a constant index_map -> Pallas keeps
    # them resident in VMEM and does not re-DMA them between grid steps.
    param_specs = [pl.BlockSpec(a.shape, lambda i: (0, 0)) for a in flat_params]
    x_spec = pl.BlockSpec((tile, IN_FEATURES), lambda i: (i, 0))
    out_spec = pl.BlockSpec((tile, LAYER_DIMS[-1]), lambda i: (i, 0))

    out_itemsize = np.dtype(out_dtype).itemsize
    cost = pl.CostEstimate(
        flops=_MATMUL_FLOPS_PER_ROW * Bp,
        transcendentals=0,
        bytes_accessed=(Bp * IN_FEATURES * 2                 # bf16 input
                        + Bp * LAYER_DIMS[-1] * out_itemsize  # output
                        + _PARAM_BYTES),
    )

    out = pl.pallas_call(
        fighter_net_kernel,
        out_shape=jax.ShapeDtypeStruct((Bp, LAYER_DIMS[-1]), out_dtype),
        grid_spec=pl.GridSpec(
            grid=(n_tiles,),
            in_specs=[x_spec] + param_specs,
            out_specs=out_spec,
        ),
        compiler_params=pltpu.CompilerParams(
            dimension_semantics=("parallel",),        # batch tiles shard across TCs (v7x)
            vmem_limit_bytes=48 * 1024 * 1024,        # few-MB usage; safe on v7x's 64 MiB
        ),
        cost_estimate=cost,
    )(x_bf, *flat_params)

    return out[:B]


def init_params(key):
    """Deterministic init mimicking nn.Linear default (uniform +/- 1/sqrt(fan_in))."""
    params = []
    for i in range(len(LAYER_DIMS) - 1):
        fan_in, fan_out = LAYER_DIMS[i], LAYER_DIMS[i + 1]
        key, kw, kb = jax.random.split(key, 3)
        bound = 1.0 / jnp.sqrt(jnp.float32(fan_in))
        w = jax.random.uniform(kw, (fan_in, fan_out), jnp.float32, -bound, bound)
        b = jax.random.uniform(kb, (fan_out,), jnp.float32, -bound, bound)
        params.append((w, b))
    return params


def reference_forward(x, params):
    """Plain-JAX f32 reference (matches the PyTorch forward; dropout p=0 is identity)."""
    h = x
    for (w, b) in params:
        h = jnp.maximum(h @ w + b, 0.0)
    return h


if __name__ == "__main__":
    key = jax.random.PRNGKey(0)
    key, kx_small, kx_big = jax.random.split(key, 3)

    params = init_params(key)
    flat_params = prepare_params(params)    # one-time cast; reused for every forward

    # Small-shape test (single minimally-padded tile).
    B_small = 8
    x_small = jax.random.normal(kx_small, (B_small, IN_FEATURES), jnp.float32)
    out_small = jax.block_until_ready(fighter_net_forward(x_small, flat_params))
    ref_small = reference_forward(x_small, params)
    assert out_small.shape == (B_small, LAYER_DIMS[-1])
    rel_err = jnp.max(jnp.abs(out_small - ref_small)) / (jnp.max(jnp.abs(ref_small)) + 1e-6)
    assert rel_err < 5e-2, f"small-batch mismatch vs reference: rel_err={rel_err}"

    # Multi-tile test (exercises the adaptive tiling / parallel grid path).
    B_big = 512
    x_big = jax.random.normal(kx_big, (B_big, IN_FEATURES), jnp.float32)
    out_big = jax.block_until_ready(
        fighter_net_forward(x_big, flat_params, batch_tile=DEFAULT_BATCH_TILE))
    ref_big = reference_forward(x_big, params)
    assert out_big.shape == (B_big, LAYER_DIMS[-1])
    rel_err = jnp.max(jnp.abs(out_big - ref_big)) / (jnp.max(jnp.abs(ref_big)) + 1e-6)
    assert rel_err < 5e-2, f"big-batch mismatch vs reference: rel_err={rel_err}"

    print("KERNEL_OK")
</pallas_src>

<mosaic_0001>
module attributes {stable_mosaic.version = 11 : i64} {
  func.func @fighter_net_kernel(%arg0: i32, %arg1: memref<8x32xbf16, #tpu.memory_space<vmem>>, %arg2: memref<32x128xbf16, #tpu.memory_space<vmem>>, %arg3: memref<1x128xf32, #tpu.memory_space<vmem>>, %arg4: memref<128x256xbf16, #tpu.memory_space<vmem>>, %arg5: memref<1x256xf32, #tpu.memory_space<vmem>>, %arg6: memref<256x512xbf16, #tpu.memory_space<vmem>>, %arg7: memref<1x512xf32, #tpu.memory_space<vmem>>, %arg8: memref<512x256xbf16, #tpu.memory_space<vmem>>, %arg9: memref<1x256xf32, #tpu.memory_space<vmem>>, %arg10: memref<256x128xbf16, #tpu.memory_space<vmem>>, %arg11: memref<1x128xf32, #tpu.memory_space<vmem>>, %arg12: memref<8x128xf32, #tpu.memory_space<vmem>>) attributes {dimension_semantics = [#tpu.dimension_semantics<parallel>], iteration_bounds = array<i64: 1>, scalar_prefetch = 0 : i64, scratch_operands = 0 : i64, tpu.core_type = #tpu.core_type<tc>, window_params = [{transform_indices = @transform_0, window_bounds = array<i64: 8, 32>}, {pipeline_mode = #tpu.pipeline_mode<synchronous>, transform_indices = @transform_1, window_bounds = array<i64: 32, 128>}, {pipeline_mode = #tpu.pipeline_mode<synchronous>, transform_indices = @transform_2, window_bounds = array<i64: 1, 128>}, {pipeline_mode = #tpu.pipeline_mode<synchronous>, transform_indices = @transform_3, window_bounds = array<i64: 128, 256>}, {pipeline_mode = #tpu.pipeline_mode<synchronous>, transform_indices = @transform_4, window_bounds = array<i64: 1, 256>}, {pipeline_mode = #tpu.pipeline_mode<synchronous>, transform_indices = @transform_5, window_bounds = array<i64: 256, 512>}, {pipeline_mode = #tpu.pipeline_mode<synchronous>, transform_indices = @transform_6, window_bounds = array<i64: 1, 512>}, {pipeline_mode = #tpu.pipeline_mode<synchronous>, transform_indices = @transform_7, window_bounds = array<i64: 512, 256>}, {pipeline_mode = #tpu.pipeline_mode<synchronous>, transform_indices = @transform_8, window_bounds = array<i64: 1, 256>}, {pipeline_mode = #tpu.pipeline_mode<synchronous>, transform_indices = @transform_9, window_bounds = array<i64: 256, 128>}, {pipeline_mode = #tpu.pipeline_mode<synchronous>, transform_indices = @transform_10, window_bounds = array<i64: 1, 128>}, {transform_indices = @transform_11, window_bounds = array<i64: 8, 128>}]} {
    %c0 = arith.constant 0 : index
    %c0_0 = arith.constant 0 : index
    %0 = vector.load %arg1[%c0, %c0_0] : memref<8x32xbf16, #tpu.memory_space<vmem>>, vector<8x32xbf16>
    %c0_1 = arith.constant 0 : index
    %c0_2 = arith.constant 0 : index
    %1 = vector.load %arg2[%c0_1, %c0_2] : memref<32x128xbf16, #tpu.memory_space<vmem>>, vector<32x128xbf16>
    %cst = arith.constant dense<0.000000e+00> : vector<8x128xf32>
    %2 = tpu.matmul %0, %1, %cst {dimension_numbers = #tpu.dot_dimension_numbers<[1], [0], [0], [1], [0, 0, 1, 1], [], []>} : vector<8x32xbf16>, vector<32x128xbf16>, vector<8x128xf32> -> vector<8x128xf32>
    %c0_3 = arith.constant 0 : index
    %c0_4 = arith.constant 0 : index
    %3 = vector.load %arg3[%c0_3, %c0_4] : memref<1x128xf32, #tpu.memory_space<vmem>>, vector<1x128xf32>
    %4 = vector.broadcast %3 : vector<1x128xf32> to vector<8x128xf32>
    %5 = arith.addf %2, %4 : vector<8x128xf32>
    %cst_5 = arith.constant 0.000000e+00 : f32
    %6 = vector.broadcast %cst_5 : f32 to vector<8x128xf32>
    %7 = arith.maximumf %5, %6 : vector<8x128xf32>
    %8 = arith.truncf %7 : vector<8x128xf32> to vector<8x128xbf16>
    %c0_6 = arith.constant 0 : index
    %c0_7 = arith.constant 0 : index
    %9 = vector.load %arg4[%c0_6, %c0_7] : memref<128x256xbf16, #tpu.memory_space<vmem>>, vector<128x256xbf16>
    %cst_8 = arith.constant dense<0.000000e+00> : vector<8x256xf32>
    %10 = tpu.matmul %8, %9, %cst_8 {dimension_numbers = #tpu.dot_dimension_numbers<[1], [0], [0], [1], [0, 0, 1, 1], [], []>} : vector<8x128xbf16>, vector<128x256xbf16>, vector<8x256xf32> -> vector<8x256xf32>
    %c0_9 = arith.constant 0 : index
    %c0_10 = arith.constant 0 : index
    %11 = vector.load %arg5[%c0_9, %c0_10] : memref<1x256xf32, #tpu.memory_space<vmem>>, vector<1x256xf32>
    %12 = vector.broadcast %11 : vector<1x256xf32> to vector<8x256xf32>
    %13 = arith.addf %10, %12 : vector<8x256xf32>
    %cst_11 = arith.constant 0.000000e+00 : f32
    %14 = vector.broadcast %cst_11 : f32 to vector<8x256xf32>
    %15 = arith.maximumf %13, %14 : vector<8x256xf32>
    %16 = arith.truncf %15 : vector<8x256xf32> to vector<8x256xbf16>
    %c0_12 = arith.constant 0 : index
    %c0_13 = arith.constant 0 : index
    %17 = vector.load %arg6[%c0_12, %c0_13] : memref<256x512xbf16, #tpu.memory_space<vmem>>, vector<256x512xbf16>
    %cst_14 = arith.constant dense<0.000000e+00> : vector<8x512xf32>
    %18 = tpu.matmul %16, %17, %cst_14 {dimension_numbers = #tpu.dot_dimension_numbers<[1], [0], [0], [1], [0, 0, 1, 1], [], []>} : vector<8x256xbf16>, vector<256x512xbf16>, vector<8x512xf32> -> vector<8x512xf32>
    %c0_15 = arith.constant 0 : index
    %c0_16 = arith.constant 0 : index
    %19 = vector.load %arg7[%c0_15, %c0_16] : memref<1x512xf32, #tpu.memory_space<vmem>>, vector<1x512xf32>
    %20 = vector.broadcast %19 : vector<1x512xf32> to vector<8x512xf32>
    %21 = arith.addf %18, %20 : vector<8x512xf32>
    %cst_17 = arith.constant 0.000000e+00 : f32
    %22 = vector.broadcast %cst_17 : f32 to vector<8x512xf32>
    %23 = arith.maximumf %21, %22 : vector<8x512xf32>
    %24 = arith.truncf %23 : vector<8x512xf32> to vector<8x512xbf16>
    %c0_18 = arith.constant 0 : index
    %c0_19 = arith.constant 0 : index
    %25 = vector.load %arg8[%c0_18, %c0_19] : memref<512x256xbf16, #tpu.memory_space<vmem>>, vector<512x256xbf16>
    %cst_20 = arith.constant dense<0.000000e+00> : vector<8x256xf32>
    %26 = tpu.matmul %24, %25, %cst_20 {dimension_numbers = #tpu.dot_dimension_numbers<[1], [0], [0], [1], [0, 0, 1, 1], [], []>} : vector<8x512xbf16>, vector<512x256xbf16>, vector<8x256xf32> -> vector<8x256xf32>
    %c0_21 = arith.constant 0 : index
    %c0_22 = arith.constant 0 : index
    %27 = vector.load %arg9[%c0_21, %c0_22] : memref<1x256xf32, #tpu.memory_space<vmem>>, vector<1x256xf32>
    %28 = vector.broadcast %27 : vector<1x256xf32> to vector<8x256xf32>
    %29 = arith.addf %26, %28 : vector<8x256xf32>
    %cst_23 = arith.constant 0.000000e+00 : f32
    %30 = vector.broadcast %cst_23 : f32 to vector<8x256xf32>
    %31 = arith.maximumf %29, %30 : vector<8x256xf32>
    %32 = arith.truncf %31 : vector<8x256xf32> to vector<8x256xbf16>
    %c0_24 = arith.constant 0 : index
    %c0_25 = arith.constant 0 : index
    %33 = vector.load %arg10[%c0_24, %c0_25] : memref<256x128xbf16, #tpu.memory_space<vmem>>, vector<256x128xbf16>
    %cst_26 = arith.constant dense<0.000000e+00> : vector<8x128xf32>
    %34 = tpu.matmul %32, %33, %cst_26 {dimension_numbers = #tpu.dot_dimension_numbers<[1], [0], [0], [1], [0, 0, 1, 1], [], []>} : vector<8x256xbf16>, vector<256x128xbf16>, vector<8x128xf32> -> vector<8x128xf32>
    %c0_27 = arith.constant 0 : index
    %c0_28 = arith.constant 0 : index
    %35 = vector.load %arg11[%c0_27, %c0_28] : memref<1x128xf32, #tpu.memory_space<vmem>>, vector<1x128xf32>
    %36 = vector.broadcast %35 : vector<1x128xf32> to vector<8x128xf32>
    %37 = arith.addf %34, %36 : vector<8x128xf32>
    %cst_29 = arith.constant 0.000000e+00 : f32
    %38 = vector.broadcast %cst_29 : f32 to vector<8x128xf32>
    %39 = arith.maximumf %37, %38 : vector<8x128xf32>
    %c0_30 = arith.constant 0 : index
    %c0_31 = arith.constant 0 : index
    %40 = vector.load %arg12[%c0_30, %c0_31] : memref<8x128xf32, #tpu.memory_space<vmem>>, vector<8x128xf32>
    tpu.vector_store %arg12[%c0_30, %c0_31], %39 {strides = array<i32>} : memref<8x128xf32, #tpu.memory_space<vmem>>, vector<8x128xf32>,
    return
  }
  func.func @transform_0(%arg0: i32) -> (i32, i32) {
    %c0_i32 = arith.constant 0 : i32
    %c0_i32_0 = arith.constant 0 : i32
    return %arg0, %c0_i32 : i32, i32
  }
  func.func @transform_1(%arg0: i32) -> (i32, i32) {
    %c0_i32 = arith.constant 0 : i32
    %c0_i32_0 = arith.constant 0 : i32
    %c0_i32_1 = arith.constant 0 : i32
    return %c0_i32, %c0_i32_0 : i32, i32
  }
  func.func @transform_2(%arg0: i32) -> (i32, i32) {
    %c0_i32 = arith.constant 0 : i32
    %c0_i32_0 = arith.constant 0 : i32
    %c0_i32_1 = arith.constant 0 : i32
    return %c0_i32, %c0_i32_0 : i32, i32
  }
  func.func @transform_3(%arg0: i32) -> (i32, i32) {
    %c0_i32 = arith.constant 0 : i32
    %c0_i32_0 = arith.constant 0 : i32
    %c0_i32_1 = arith.constant 0 : i32
    return %c0_i32, %c0_i32_0 : i32, i32
  }
  func.func @transform_4(%arg0: i32) -> (i32, i32) {
    %c0_i32 = arith.constant 0 : i32
    %c0_i32_0 = arith.constant 0 : i32
    %c0_i32_1 = arith.constant 0 : i32
    return %c0_i32, %c0_i32_0 : i32, i32
  }
  func.func @transform_5(%arg0: i32) -> (i32, i32) {
    %c0_i32 = arith.constant 0 : i32
    %c0_i32_0 = arith.constant 0 : i32
    %c0_i32_1 = arith.constant 0 : i32
    return %c0_i32, %c0_i32_0 : i32, i32
  }
  func.func @transform_6(%arg0: i32) -> (i32, i32) {
    %c0_i32 = arith.constant 0 : i32
    %c0_i32_0 = arith.constant 0 : i32
    %c0_i32_1 = arith.constant 0 : i32
    return %c0_i32, %c0_i32_0 : i32, i32
  }
  func.func @transform_7(%arg0: i32) -> (i32, i32) {
    %c0_i32 = arith.constant 0 : i32
    %c0_i32_0 = arith.constant 0 : i32
    %c0_i32_1 = arith.constant 0 : i32
    return %c0_i32, %c0_i32_0 : i32, i32
  }
  func.func @transform_8(%arg0: i32) -> (i32, i32) {
    %c0_i32 = arith.constant 0 : i32
    %c0_i32_0 = arith.constant 0 : i32
    %c0_i32_1 = arith.constant 0 : i32
    return %c0_i32, %c0_i32_0 : i32, i32
  }
  func.func @transform_9(%arg0: i32) -> (i32, i32) {
    %c0_i32 = arith.constant 0 : i32
    %c0_i32_0 = arith.constant 0 : i32
    %c0_i32_1 = arith.constant 0 : i32
    return %c0_i32, %c0_i32_0 : i32, i32
  }
  func.func @transform_10(%arg0: i32) -> (i32, i32) {
    %c0_i32 = arith.constant 0 : i32
    %c0_i32_0 = arith.constant 0 : i32
    %c0_i32_1 = arith.constant 0 : i32
    return %c0_i32, %c0_i32_0 : i32, i32
  }
  func.func @transform_11(%arg0: i32) -> (i32, i32) {
    %c0_i32 = arith.constant 0 : i32
    %c0_i32_0 = arith.constant 0 : i32
    return %arg0, %c0_i32 : i32, i32
  }
}

</mosaic_0001>

<bundles_post_ra>
// kernel: fighter_net_forward.1
= control target key start
LH: loop header
LB: loop body
LE: loop exit
PB: predicated region body
PF: predicated region fallthrough
CT: control target
= control target key end

     0   :  { %16 = vsyncpa [#allocation3], 0  ;;  %s2292_s0 = inlined_call_operand.vmem [shape: bf16[8,32], index: 0, kind: input, shape index: {}]   ;;  %s2293_s1 = inlined_call_operand.hbm [shape: bf16[32,128], index: 1, kind: input, shape index: {}]   ;;  %s2294_s2 = inlined_call_operand.vmem [shape: f32[1,128], index: 2, kind: input, shape index: {}]   ;;  %s2295_s3 = inlined_call_operand.hbm [shape: bf16[128,256], index: 3, kind: input, shape index: {}]   ;;  %s2296_s4 = inlined_call_operand.vmem [shape: f32[1,256], index: 4, kind: input, shape index: {}]   ;;  %s2297_s5 = inlined_call_operand.hbm [shape: bf16[256,512], index: 5, kind: input, shape index: {}]   ;;  %s2298_s6 = inlined_call_operand.vmem [shape: f32[1,512], index: 6, kind: input, shape index: {}]   ;;  %s2299_s7 = inlined_call_operand.hbm [shape: bf16[512,256], index: 7, kind: input, shape index: {}]   ;;  %s2300_s8 = inlined_call_operand.vmem [shape: f32[1,256], index: 8, kind: input, shape index: {}]   ;;  %s2301_s9 = inlined_call_operand.hbm [shape: bf16[256,128], index: 9, kind: input, shape index: {}]   ;;  %s2302_s10 = inlined_call_operand.vmem [shape: f32[1,128], index: 10, kind: input, shape index: {}]   ;;  %s2303_s11 = inlined_call_operand.hbm [shape: f32[8,128], index: 11, kind: output, shape index: {}]  }
   0x1   :  { %17 = vsyncpa [#allocation6], 0 }
   0x2   :  { %18 = vsyncpa [#allocation9], 0 }
   0x3   :  { %19 = vsyncpa [#allocation4], 0  ;;  %s2096_s17 = smov [#allocation5]   ;;  %s1956_s21 = scalar_lea.hbm %s2295_s3, 2048 }
   0x4   :  { %s41_s18 = sshll.u32 %s2096_s17, 4  ;;  %p1957_p0 = scmp.ne.s32.totalorder %s2295_s3, %s1956_s21  ;;  %s42_s18 = int_to_ptr.vmem [resolvable:$true] %s41_s18 }
   0x5   :  { %p1960_p1 = scmp.lt.u32.totalorder %s1956_s21, %s2295_s3 }
   0x7   :  { %p1962_p2 = pnand %p1960_p1, %p1957_p0 }
   0x9   :  { %1965 = shalt.err (!%p1962_p2)
}
   0xa   :  { %s1966_s26 = scalar_lea.vmem %s42_s18, 2048  ;;  %p1971_p4 = scmp.lt.s32.totalorder %s42_s18, %s42_s18 }
   0xb   :  { %p1967_p3 = scmp.ne.s32.totalorder %s42_s18, %s1966_s26  ;;  %p1972_p5 = scmp.lt.s32.totalorder %s1966_s26, %s1966_s26 }
   0xd   :  { %p1973_p6 = por %p1972_p5, %p1971_p4 }
   0xf   :  { %p1974_p7 = pnand %p1973_p6, %p1967_p3 }
  0x11   :  { %1977 = shalt.err (!%p1974_p7)
}
  0x12   :  { %s2097_s27 = smov 128   ;;  %s2098_s28 = smov 8  }
  0x13   :  { %47 = dma.hbm_to_vmem [thread:$0]  %s2295_s3, 2048, %s42_s18, [#allocation6], %s2097_s27, %s2097_s27, %s2098_s28  }
  0x14   :  { %s2099_s12 = smov [#allocation8]   ;;  %s2100_s14 = smov [#allocation2]  }
  0x15   :  { %s69_s13 = sshll.u32 %s2099_s12, 4  ;;  %s27_s15 = sshll.u32 %s2100_s14, 4  ;;  %s70_s13 = int_to_ptr.vmem [resolvable:$true] %s69_s13  ;;  %s28_s15 = int_to_ptr.vmem [resolvable:$true] %s27_s15 }
  0x16   :  { %s1978_s19 = scalar_lea.hbm %s2299_s7, 8192 }
  0x17   :  { %p1979_p8 = scmp.ne.s32.totalorder %s2299_s7, %s1978_s19  ;;  %p1982_p9 = scmp.lt.u32.totalorder %s1978_s19, %s2299_s7 }
  0x19   :  { %p1984_p10 = pnand %p1982_p9, %p1979_p8 }
  0x1b   :  { %1987 = shalt.err (!%p1984_p10)
}
  0x1c   :  { %s1988_s3 = scalar_lea.vmem %s70_s13, 8192  ;;  %p1993_p12 = scmp.lt.s32.totalorder %s70_s13, %s70_s13 }
  0x1d   :  { %p1989_p11 = scmp.ne.s32.totalorder %s70_s13, %s1988_s3  ;;  %p1994_p13 = scmp.lt.s32.totalorder %s1988_s3, %s1988_s3 }
  0x1f   :  { %p1995_p0 = por %p1994_p13, %p1993_p12 }
  0x21   :  { %p1996_p1 = pnand %p1995_p0, %p1989_p11 }
  0x23   :  { %1999 = shalt.err (!%p1996_p1)
}
  0x24   :  { %75 = dma.hbm_to_vmem [thread:$0]  %s2299_s7, 8192, %s70_s13, [#allocation9], %s2097_s27, %s2097_s27, %s2098_s28  }
  0x25   :  { %s2000_s29 = scalar_lea.hbm %s2293_s1, 256 }
  0x26   :  { %p2001_p2 = scmp.ne.s32.totalorder %s2293_s1, %s2000_s29  ;;  %p2004_p3 = scmp.lt.u32.totalorder %s2000_s29, %s2293_s1 }
  0x28   :  { %p2006_p4 = pnand %p2004_p3, %p2001_p2 }
  0x2a   :  { %2009 = shalt.err (!%p2006_p4)
}
  0x2b   :  { %s2010_s17 = scalar_lea.vmem %s28_s15, 256  ;;  %p2015_p6 = scmp.lt.s32.totalorder %s28_s15, %s28_s15 }
  0x2c   :  { %p2011_p5 = scmp.ne.s32.totalorder %s28_s15, %s2010_s17  ;;  %p2016_p7 = scmp.lt.s32.totalorder %s2010_s17, %s2010_s17 }
  0x2e   :  { %p2017_p8 = por %p2016_p7, %p2015_p6 }
  0x30   :  { %p2018_p9 = pnand %p2017_p8, %p2011_p5 }
  0x32   :  { %2021 = shalt.err (!%p2018_p9)
}
  0x33   :  { %s2101_s7 = smov 64   ;;  %s2102_s27 = smov 4  }
  0x34   :  { %33 = dma.hbm_to_vmem [thread:$0]  %s2293_s1, 256, %s28_s15, [#allocation3], %s2101_s7, %s2101_s7, %s2102_s27  }
  0x35   :  { %s2103_s19 = smov [#allocation7]   ;;  %s2022_s23 = scalar_lea.hbm %s2297_s5, 8192 }
  0x36   :  { %s55_s20 = sshll.u32 %s2103_s19, 4  ;;  %p2023_p10 = scmp.ne.s32.totalorder %s2297_s5, %s2022_s23  ;;  %s56_s20 = int_to_ptr.vmem [resolvable:$true] %s55_s20 }
  0x37   :  { %p2026_p11 = scmp.lt.u32.totalorder %s2022_s23, %s2297_s5 }
  0x39   :  { %p2028_p12 = pnand %p2026_p11, %p2023_p10 }
  0x3b   :  { %2031 = shalt.err (!%p2028_p12)
}
  0x3c   :  { %s2032_s26 = scalar_lea.vmem %s56_s20, 8192  ;;  %p2037_p0 = scmp.lt.s32.totalorder %s56_s20, %s56_s20 }
  0x3d   :  { %p2033_p13 = scmp.ne.s32.totalorder %s56_s20, %s2032_s26  ;;  %p2038_p1 = scmp.lt.s32.totalorder %s2032_s26, %s2032_s26 }
  0x3f   :  { %p2039_p2 = por %p2038_p1, %p2037_p0 }
  0x41   :  { %p2040_p3 = pnand %p2039_p2, %p2033_p13 }
  0x43   :  { %2043 = shalt.err (!%p2040_p3)
}
  0x44   :  { %s2104_s1 = smov 256   ;;  %s2105_s15 = smov 16  }
  0x45   :  { %61 = dma.hbm_to_vmem [thread:$0]  %s2297_s5, 8192, %s56_s20, [#allocation6], %s2104_s1, %s2104_s1, %s2105_s15  }
  0x46   :  { %s2106_s12 = smov [#allocation10]   ;;  %s2044_s28 = scalar_lea.hbm %s2301_s9, 2048 }
  0x47   :  { %s83_s14 = sshll.u32 %s2106_s12, 4  ;;  %p2045_p4 = scmp.ne.s32.totalorder %s2301_s9, %s2044_s28  ;;  %s84_s14 = int_to_ptr.vmem [resolvable:$true] %s83_s14 }
  0x48   :  { %p2048_p5 = scmp.lt.u32.totalorder %s2044_s28, %s2301_s9 }
  0x4a   :  { %p2050_p6 = pnand %p2048_p5, %p2045_p4 }
  0x4c   :  { %2053 = shalt.err (!%p2050_p6)
}
  0x4d   :  { %s2054_s23 = scalar_lea.vmem %s84_s14, 2048  ;;  %p2059_p8 = scmp.lt.s32.totalorder %s84_s14, %s84_s14 }
  0x4e   :  { %p2055_p7 = scmp.ne.s32.totalorder %s84_s14, %s2054_s23  ;;  %p2060_p9 = scmp.lt.s32.totalorder %s2054_s23, %s2054_s23 }
  0x50   :  { %p2061_p10 = por %p2060_p9, %p2059_p8 }
  0x52   :  { %p2062_p11 = pnand %p2061_p10, %p2055_p7 }
  0x54   :  { %2065 = shalt.err (!%p2062_p11)
}
  0x55   :  { %89 = dma.hbm_to_vmem [thread:$0]  %s2301_s9, 2048, %s84_s14, [#allocation9], %s2101_s7, %s2101_s7, %s2102_s27  }
  0x56   :  { %2088 = dma.done.wait [#allocation3], 256  }
  0x57   :  { %2089 = vsyncadd [#allocation3], 4294967040 }
  0x58   :  { %2090 = dma.done.wait [#allocation6], 10240  }
  0x59   :  { %2091 = vsyncadd [#allocation6], 4294957056 }
  0x5a   :  { %2092 = dma.done.wait [#allocation9], 10240  }
  0x5b   :  { %2093 = vsyncadd [#allocation9], 4294957056  ;;  %v2107_v0 = vmov 0.0   ;;  %vm2108_vm0 = vmmov 0   ;;  %v1722_v1 = vld [vmem:[#allocation2] sm:$0xff]   ;;  %v1723_v2 = vld [vmem:[#allocation2 + $0x8] sm:$0xff]  }
  0x5c   :  { %1693 = vmatprep.subr.bf16.mxu1 %v2107_v0  ;;  %1697 = vmatprep.mubr.msk.bf16.mxu1 %vm2108_vm0, %v2107_v0  ;;  %v1726_v3 = vld [vmem:[#allocation5 + $0x4] ss:$8 sps:$4 sm:$0xff]   ;;  %v108_v4 = vld [vmem:[%s2292_s0] sm:$0xf]  ;;  %vm132_vm1 = vcmask 261120   ;;  %v2109_v20 = vmov 0  }
  0x5d   :  { %1694 = vmatpush3.bf16.msra.mxu1 %v1722_v1  ;;  %v1724_v5 = vld [vmem:[#allocation5] ss:$8 sps:$4 sm:$0xff]   ;;  %v1729_v6 = vld [vmem:[#allocation5 + $0x14] ss:$8 sps:$4 sm:$0xff]   ;;  %v1727_v7 = vld [vmem:[#allocation5 + $0x10] ss:$8 sps:$4 sm:$0xff]  }
  0x5e   :  { %1695 = vmatprep.subr.bf16.mxu1 %v2107_v0  ;;  %v1732_v8 = vld [vmem:[#allocation5 + $0x24] ss:$8 sps:$4 sm:$0xff]   ;;  %v1730_v9 = vld [vmem:[#allocation5 + $0x20] ss:$8 sps:$4 sm:$0xff]   ;;  %v1735_v10 = vld [vmem:[#allocation5 + $0x34] ss:$8 sps:$4 sm:$0xff]  }
  0x5f   :  { %v1733_v11 = vld [vmem:[#allocation5 + $0x30] ss:$8 sps:$4 sm:$0xff]   ;;  %v1738_v12 = vld [vmem:[#allocation5 + $0x44] ss:$8 sps:$4 sm:$0xff]   ;;  %v1736_v13 = vld [vmem:[#allocation5 + $0x40] ss:$8 sps:$4 sm:$0xff]  }
  0x60   :  { %v1741_v14 = vld [vmem:[#allocation5 + $0x54] ss:$8 sps:$4 sm:$0xff]   ;;  %v1739_v15 = vld [vmem:[#allocation5 + $0x50] ss:$8 sps:$4 sm:$0xff]   ;;  %v1744_v16 = vld [vmem:[#allocation5 + $0x64] ss:$8 sps:$4 sm:$0xff]  }
  0x61   :  { %1696 = vmatpush3.bf16.msra.mxu1 %v1723_v2  ;;  %v1742_v17 = vld [vmem:[#allocation5 + $0x60] ss:$8 sps:$4 sm:$0xff]   ;;  %v1747_v18 = vld [vmem:[#allocation5 + $0x74] ss:$8 sps:$4 sm:$0xff]   ;;  %v1745_v19 = vld [vmem:[#allocation5 + $0x70] ss:$8 sps:$4 sm:$0xff]  }
  0x62   :  { %286 = vmatprep.subr.bf16.mxu1 %v1726_v3  ;;  %v1748_v21 = vld [vmem:[#allocation7 + $0x4] ss:$16 sps:$4 sm:$0xff]   ;;  %v1752_v22 = vld [vmem:[#allocation7 + $0xc] ss:$16 sps:$4 sm:$0xff]   ;;  %v1753_v23 = vld [vmem:[#allocation7] ss:$16 sps:$4 sm:$0xff]  }
  0x63   :  { %v1754_v24 = vld [vmem:[#allocation7 + $0x24] ss:$16 sps:$4 sm:$0xff]   ;;  %737 = vmatprep.subr.bf16.mxu0 %v1748_v21  ;;  %v1759_v25 = vld [vmem:[#allocation7 + $0x20] ss:$16 sps:$4 sm:$0xff]   ;;  %v1503_v50 = vld [vmem:[%s2294_s2] ss:$0 sm:$0xff] }
  0x64   :  { %1698 = vmatmul.mubr.msk.bf16.vlgmr.msra.gmra.mrb[0].mxu1 %vm132_vm1, %v108_v4  ;;  %738 = vmatpush1.bf16.msra.mxu0 %v1753_v23  ;;  %v1760_v26 = vld [vmem:[#allocation7 + $0x44] ss:$16 sps:$4 sm:$0xff]   ;;  %v1765_v27 = vld [vmem:[#allocation7 + $0x40] ss:$16 sps:$4 sm:$0xff]   ;;  %v1750_v57 = vld [vmem:[#allocation7 + $0x8] ss:$16 sps:$4 sm:$0xff]  }
  0x65   :  { %287 = vmatpush1.bf16.msra.mxu1 %v1724_v5  ;;  %318 = vmatprep.mubr.bf16.mxu1 %v2109_v20  ;;  %v1766_v28 = vld [vmem:[#allocation7 + $0x64] ss:$16 sps:$4 sm:$0xff]   ;;  %v1771_v29 = vld [vmem:[#allocation7 + $0x60] ss:$16 sps:$4 sm:$0xff]   ;;  %v1758_v59 = vld [vmem:[#allocation7 + $0x2c] ss:$16 sps:$4 sm:$0xff]  }
  0x66   :  { %288 = vmatprep.subr.bf16.mxu1 %v1729_v6  ;;  %739 = vmatprep.subr.bf16.mxu0 %v1754_v24  ;;  %v1772_v30 = vld [vmem:[#allocation7 + $0x84] ss:$16 sps:$4 sm:$0xff]   ;;  %v1777_v31 = vld [vmem:[#allocation7 + $0x80] ss:$16 sps:$4 sm:$0xff]   ;;  %v1756_v60 = vld [vmem:[#allocation7 + $0x28] ss:$16 sps:$4 sm:$0xff]  }
  0x67   :  { %v1778_v32 = vld [vmem:[#allocation7 + $0xa4] ss:$16 sps:$4 sm:$0xff]   ;;  %v1783_v33 = vld [vmem:[#allocation7 + $0xa0] ss:$16 sps:$4 sm:$0xff]   ;;  %v1764_v61 = vld [vmem:[#allocation7 + $0x4c] ss:$16 sps:$4 sm:$0xff]  }
  0x68   :  { %740 = vmatpush1.bf16.msra.mxu0 %v1759_v25  ;;  %v1784_v34 = vld [vmem:[#allocation7 + $0xc4] ss:$16 sps:$4 sm:$0xff]   ;;  %v1789_v35 = vld [vmem:[#allocation7 + $0xc0] ss:$16 sps:$4 sm:$0xff]   ;;  %v1762_v62 = vld [vmem:[#allocation7 + $0x48] ss:$16 sps:$4 sm:$0xff]  }
  0x69   :  { %289 = vmatpush1.bf16.msra.mxu1 %v1727_v7  ;;  %741 = vmatprep.subr.bf16.mxu0 %v1760_v26  ;;  %v1790_v36 = vld [vmem:[#allocation7 + $0xe4] ss:$16 sps:$4 sm:$0xff]   ;;  %v1795_v37 = vld [vmem:[#allocation7 + $0xe0] ss:$16 sps:$4 sm:$0xff]   ;;  %v1770_v63 = vld [vmem:[#allocation7 + $0x6c] ss:$16 sps:$4 sm:$0xff]  }
  0x6a   :  { %290 = vmatprep.subr.bf16.mxu1 %v1732_v8  ;;  %v1796_v38 = vld [vmem:[#allocation7 + $0x104] ss:$16 sps:$4 sm:$0xff]   ;;  %v1801_v39 = vld [vmem:[#allocation7 + $0x100] ss:$16 sps:$4 sm:$0xff]   ;;  %v1768_v0 = vld [vmem:[#allocation7 + $0x68] ss:$16 sps:$4 sm:$0xff]  }
  0x6b   :  { %v1802_v40 = vld [vmem:[#allocation7 + $0x124] ss:$16 sps:$4 sm:$0xff]   ;;  %v1807_v41 = vld [vmem:[#allocation7 + $0x120] ss:$16 sps:$4 sm:$0xff]   ;;  %v1776_v1 = vld [vmem:[#allocation7 + $0x8c] ss:$16 sps:$4 sm:$0xff]  }
  0x6c   :  { %742 = vmatpush1.bf16.msra.mxu0 %v1765_v27  ;;  %v1808_v42 = vld [vmem:[#allocation7 + $0x144] ss:$16 sps:$4 sm:$0xff]   ;;  %v1813_v43 = vld [vmem:[#allocation7 + $0x140] ss:$16 sps:$4 sm:$0xff]   ;;  %v1774_v2 = vld [vmem:[#allocation7 + $0x88] ss:$16 sps:$4 sm:$0xff]  }
  0x6d   :  { %291 = vmatpush1.bf16.msra.mxu1 %v1730_v9  ;;  %743 = vmatprep.subr.bf16.mxu0 %v1766_v28  ;;  %v1814_v44 = vld [vmem:[#allocation7 + $0x164] ss:$16 sps:$4 sm:$0xff]   ;;  %v1819_v45 = vld [vmem:[#allocation7 + $0x160] ss:$16 sps:$4 sm:$0xff]   ;;  %v1782_v3 = vld [vmem:[#allocation7 + $0xac] ss:$16 sps:$4 sm:$0xff]  }
  0x6e   :  { %292 = vmatprep.subr.bf16.mxu1 %v1735_v10  ;;  %v1820_v46 = vld [vmem:[#allocation7 + $0x184] ss:$16 sps:$4 sm:$0xff]   ;;  %v1825_v47 = vld [vmem:[#allocation7 + $0x180] ss:$16 sps:$4 sm:$0xff]   ;;  %v1780_v4 = vld [vmem:[#allocation7 + $0xa8] ss:$16 sps:$4 sm:$0xff]  }
  0x6f   :  { %v1826_v48 = vld [vmem:[#allocation7 + $0x1a4] ss:$16 sps:$4 sm:$0xff]   ;;  %v1831_v49 = vld [vmem:[#allocation7 + $0x1a0] ss:$16 sps:$4 sm:$0xff]   ;;  %v1788_v5 = vld [vmem:[#allocation7 + $0xcc] ss:$16 sps:$4 sm:$0xff]  }
  0x70   :  { %744 = vmatpush1.bf16.msra.mxu0 %v1771_v29  ;;  %v1786_v6 = vld [vmem:[#allocation7 + $0xc8] ss:$16 sps:$4 sm:$0xff]   ;;  %v1794_v7 = vld [vmem:[#allocation7 + $0xec] ss:$16 sps:$4 sm:$0xff]   ;;  %v1832_v21 = vld [vmem:[#allocation7 + $0x1c4] ss:$16 sps:$4 sm:$0xff]  }
  0x71   :  { %293 = vmatpush1.bf16.msra.mxu1 %v1733_v11  ;;  %745 = vmatprep.subr.bf16.mxu0 %v1772_v30  ;;  %v1792_v8 = vld [vmem:[#allocation7 + $0xe8] ss:$16 sps:$4 sm:$0xff]   ;;  %v1800_v9 = vld [vmem:[#allocation7 + $0x10c] ss:$16 sps:$4 sm:$0xff]   ;;  %v1837_v24 = vld [vmem:[#allocation7 + $0x1c0] ss:$16 sps:$4 sm:$0xff]   ;;  %v196_v30 = vlaneseq }
  0x72   :  { %294 = vmatprep.subr.bf16.mxu1 %v1738_v12  ;;  %v1798_v10 = vld [vmem:[#allocation7 + $0x108] ss:$16 sps:$4 sm:$0xff]   ;;  %v1806_v11 = vld [vmem:[#allocation7 + $0x12c] ss:$16 sps:$4 sm:$0xff]   ;;  %v1838_v25 = vld [vmem:[#allocation7 + $0x1e4] ss:$16 sps:$4 sm:$0xff]  }
  0x73   :  { %v1804_v12 = vld [vmem:[#allocation7 + $0x128] ss:$16 sps:$4 sm:$0xff]   ;;  %v1842_v26 = vld [vmem:[#allocation7 + $0x1ec] ss:$16 sps:$4 sm:$0xff]   ;;  %v1843_v28 = vld [vmem:[#allocation7 + $0x1e0] ss:$16 sps:$4 sm:$0xff]  }
  0x74   :  { %746 = vmatpush1.bf16.msra.mxu0 %v1777_v31  ;;  %v1828_v20 = vld [vmem:[#allocation7 + $0x1a8] ss:$16 sps:$4 sm:$0xff]   ;;  %v1846_v29 = vld [vmem:[#allocation8 + $0x4] ss:$8 sps:$4 sm:$0xff]   ;;  %v2243_v31 = vshrl.u32 %v196_v30, 7 }
  0x75   :  { %295 = vmatpush1.bf16.msra.mxu1 %v1736_v13  ;;  %747 = vmatprep.subr.bf16.mxu0 %v1778_v32  ;;  %v1812_v13 = vld [vmem:[#allocation7 + $0x14c] ss:$16 sps:$4 sm:$0xff]   ;;  %v1834_v23 = vld [vmem:[#allocation7 + $0x1c8] ss:$16 sps:$4 sm:$0xff]  }
  0x76   :  { %296 = vmatprep.subr.bf16.mxu1 %v1741_v14  ;;  %v1810_v14 = vld [vmem:[#allocation7 + $0x148] ss:$16 sps:$4 sm:$0xff]   ;;  %v2246_v32 = vsub.s32 0, %v2243_v31 }
  0x77   :  { %v1840_v27 = vld [vmem:[#allocation7 + $0x1e8] ss:$16 sps:$4 sm:$0xff]  }
  0x78   :  { %748 = vmatpush1.bf16.msra.mxu0 %v1783_v33  ;;  %v194_v33 = vld [vmem:[%s2296_s4] sm:$0x3] }
  0x79   :  { %297 = vmatpush1.bf16.msra.mxu1 %v1739_v15  ;;  %749 = vmatprep.subr.bf16.mxu0 %v1784_v34  ;;  %v1818_v15 = vld [vmem:[#allocation7 + $0x16c] ss:$16 sps:$4 sm:$0xff]   ;;  %v2252_v34 = vsub.s32 1, %v2243_v31 }
  0x7a   :  { %298 = vmatprep.subr.bf16.mxu1 %v1744_v16  ;;  %v1816_v16 = vld [vmem:[#allocation7 + $0x168] ss:$16 sps:$4 sm:$0xff]  }
  0x7c   :  { %750 = vmatpush1.bf16.msra.mxu0 %v1789_v35  ;;  %v199_v35 = vrot.slane %v194_v33, %v2246_v32 }
  0x7d   :  { %299 = vmatpush1.bf16.msra.mxu1 %v1742_v17  ;;  %751 = vmatprep.subr.bf16.mxu0 %v1790_v36  ;;  %v1824_v17 = vld [vmem:[#allocation7 + $0x18c] ss:$16 sps:$4 sm:$0xff]   ;;  %v203_v36 = vrot.slane %v194_v33, %v2252_v34 }
  0x7e   :  { %300 = vmatprep.subr.bf16.mxu1 %v1747_v18  ;;  %v1822_v18 = vld [vmem:[#allocation7 + $0x188] ss:$16 sps:$4 sm:$0xff]  }
  0x80   :  { %752 = vmatpush1.bf16.msra.mxu0 %v1795_v37 }
  0x81   :  { %301 = vmatpush1.bf16.msra.mxu1 %v1745_v19  ;;  %753 = vmatprep.subr.bf16.mxu0 %v1796_v38  ;;  %v1830_v19 = vld [vmem:[#allocation7 + $0x1ac] ss:$16 sps:$4 sm:$0xff]  }
  0x82   :  { %778 = vmatprep.subr.bf16.mxu1 %v1752_v22  ;;  %v1836_v22 = vld [vmem:[#allocation7 + $0x1cc] ss:$16 sps:$4 sm:$0xff]  }
  0x84   :  { %754 = vmatpush1.bf16.msra.mxu0 %v1801_v39 }
  0x85   :  { %755 = vmatprep.subr.bf16.mxu0 %v1802_v40 }
  0x88   :  { %756 = vmatpush1.bf16.msra.mxu0 %v1807_v41 }
  0x89   :  { %757 = vmatprep.subr.bf16.mxu0 %v1808_v42 }
  0x8c   :  { %758 = vmatpush1.bf16.msra.mxu0 %v1813_v43 }
  0x8d   :  { %759 = vmatprep.subr.bf16.mxu0 %v1814_v44 }
  0x90   :  { %760 = vmatpush1.bf16.msra.mxu0 %v1819_v45 }
  0x91   :  { %761 = vmatprep.subr.bf16.mxu0 %v1820_v46  ;;  %v1844_v46 = vld [vmem:[#allocation8] ss:$8 sps:$4 sm:$0xff]  }
  0x94   :  { %762 = vmatpush1.bf16.msra.mxu0 %v1825_v47 }
  0x95   :  { %763 = vmatprep.subr.bf16.mxu0 %v1826_v48  ;;  %v1849_v48 = vld [vmem:[#allocation8 + $0x14] ss:$8 sps:$4 sm:$0xff]  }
  0x98   :  { %764 = vmatpush1.bf16.msra.mxu0 %v1831_v49  ;;  %v1847_v49 = vld [vmem:[#allocation8 + $0x10] ss:$8 sps:$4 sm:$0xff]  }
  0x99   :  { %765 = vmatprep.subr.bf16.mxu0 %v1832_v21  ;;  %v1946_v21 = vld [vmem:[#allocation10 + $0x58] sm:$0xff]  }
  0x9c   :  { %766 = vmatpush1.bf16.msra.mxu0 %v1837_v24  ;;  %v1949_v24 = vld [vmem:[#allocation10 + $0x20] sm:$0xff]  }
  0x9d   :  { %767 = vmatprep.subr.bf16.mxu0 %v1838_v25  ;;  %v1950_v25 = vld [vmem:[#allocation10 + $0x68] sm:$0xff]  }
  0xa0   :  { %768 = vmatpush1.bf16.msra.mxu0 %v1843_v28  ;;  %v411_v28 = vsub.s32 3, %v2243_v31 }
  0xa1   :  { %1223 = vmatprep.subr.bf16.mxu0 %v1846_v29 }
 0x137   :  { %v170_v51 = vpop.f32.mrb[0].mxu1 }
 0x138   :  { %v171_v52 = vadd.f32 %v1503_v50, %v170_v51  ;;  %v1699_v53 = vpop.f32.mrb[1].mxu1  ;;  %v1852_v50 = vld [vmem:[#allocation8 + $0x24] ss:$8 sps:$4 sm:$0xff]   ;;  %v1850_v51 = vld [vmem:[#allocation8 + $0x20] ss:$8 sps:$4 sm:$0xff]  }
 0x139   :  { %v173_v54 = vpop.f32.mrb[2].mxu1  ;;  %v1853_v53 = vld [vmem:[#allocation8 + $0x30] ss:$8 sps:$4 sm:$0xff]  }
 0x13a   :  { %v176_v55 = vmax.f32 %v171_v52, 0.0  ;;  %v1700_v56 = vpop.f32.mrb[3].mxu1  ;;  %v1855_v52 = vld [vmem:[#allocation8 + $0x34] ss:$8 sps:$4 sm:$0xff]   ;;  %v1858_v54 = vld [vmem:[#allocation8 + $0x44] ss:$8 sps:$4 sm:$0xff]  }
 0x13b   :  { %v1861_v56 = vld [vmem:[#allocation8 + $0x54] ss:$8 sps:$4 sm:$0xff]  }
 0x13c   :  { %v177_v58 = vpack.c.bf16 %v176_v55, %v176_v55  ;;  %v1856_v55 = vld [vmem:[#allocation8 + $0x40] ss:$8 sps:$4 sm:$0xff]  }
 0x13e   :  { %319 = vmatmul.mubr.bf16.vlgmr.msra.gmra.mrb[4].mxu1 %v177_v58  ;;  %v1864_v58 = vld [vmem:[#allocation8 + $0x64] ss:$8 sps:$4 sm:$0xff]  }
 0x13f   :  { %779 = vmatpush1.bf16.msra.mxu1 %v1750_v57  ;;  %v1859_v57 = vld [vmem:[#allocation8 + $0x50] ss:$8 sps:$4 sm:$0xff]  }
 0x140   :  { %780 = vmatprep.subr.bf16.mxu1 %v1758_v59  ;;  %v1862_v59 = vld [vmem:[#allocation8 + $0x60] ss:$8 sps:$4 sm:$0xff]  }
 0x143   :  { %781 = vmatpush1.bf16.msra.mxu1 %v1756_v60  ;;  %v1867_v60 = vld [vmem:[#allocation8 + $0x74] ss:$8 sps:$4 sm:$0xff]  }
 0x144   :  { %782 = vmatprep.subr.bf16.mxu1 %v1764_v61  ;;  %v1865_v61 = vld [vmem:[#allocation8 + $0x70] ss:$8 sps:$4 sm:$0xff]  }
 0x147   :  { %783 = vmatpush1.bf16.msra.mxu1 %v1762_v62  ;;  %v1870_v62 = vld [vmem:[#allocation8 + $0x84] ss:$8 sps:$4 sm:$0xff]  }
 0x148   :  { %784 = vmatprep.subr.bf16.mxu1 %v1770_v63  ;;  %v1868_v63 = vld [vmem:[#allocation8 + $0x80] ss:$8 sps:$4 sm:$0xff]  }
 0x14b   :  { %785 = vmatpush1.bf16.msra.mxu1 %v1768_v0  ;;  %v1873_v0 = vld [vmem:[#allocation8 + $0x94] ss:$8 sps:$4 sm:$0xff]  }
 0x14c   :  { %786 = vmatprep.subr.bf16.mxu1 %v1776_v1  ;;  %v1871_v1 = vld [vmem:[#allocation8 + $0x90] ss:$8 sps:$4 sm:$0xff]  }
 0x14f   :  { %787 = vmatpush1.bf16.msra.mxu1 %v1774_v2  ;;  %v1876_v2 = vld [vmem:[#allocation8 + $0xa4] ss:$8 sps:$4 sm:$0xff]  }
 0x150   :  { %788 = vmatprep.subr.bf16.mxu1 %v1782_v3  ;;  %v1874_v3 = vld [vmem:[#allocation8 + $0xa0] ss:$8 sps:$4 sm:$0xff]  }
 0x153   :  { %789 = vmatpush1.bf16.msra.mxu1 %v1780_v4  ;;  %v1879_v4 = vld [vmem:[#allocation8 + $0xb4] ss:$8 sps:$4 sm:$0xff]  }
 0x154   :  { %790 = vmatprep.subr.bf16.mxu1 %v1788_v5  ;;  %v1877_v5 = vld [vmem:[#allocation8 + $0xb0] ss:$8 sps:$4 sm:$0xff]  }
 0x157   :  { %791 = vmatpush1.bf16.msra.mxu1 %v1786_v6  ;;  %v1882_v6 = vld [vmem:[#allocation8 + $0xc4] ss:$8 sps:$4 sm:$0xff]  }
 0x158   :  { %792 = vmatprep.subr.bf16.mxu1 %v1794_v7  ;;  %v1880_v7 = vld [vmem:[#allocation8 + $0xc0] ss:$8 sps:$4 sm:$0xff]  }
 0x15b   :  { %793 = vmatpush1.bf16.msra.mxu1 %v1792_v8  ;;  %v1885_v8 = vld [vmem:[#allocation8 + $0xd4] ss:$8 sps:$4 sm:$0xff]  }
 0x15c   :  { %794 = vmatprep.subr.bf16.mxu1 %v1800_v9  ;;  %v1883_v9 = vld [vmem:[#allocation8 + $0xd0] ss:$8 sps:$4 sm:$0xff]  }
 0x15f   :  { %795 = vmatpush1.bf16.msra.mxu1 %v1798_v10  ;;  %v1888_v10 = vld [vmem:[#allocation8 + $0xe4] ss:$8 sps:$4 sm:$0xff]  }
 0x160   :  { %796 = vmatprep.subr.bf16.mxu1 %v1806_v11  ;;  %v1886_v11 = vld [vmem:[#allocation8 + $0xe0] ss:$8 sps:$4 sm:$0xff]  }
 0x163   :  { %797 = vmatpush1.bf16.msra.mxu1 %v1804_v12  ;;  %v1891_v12 = vld [vmem:[#allocation8 + $0xf4] ss:$8 sps:$4 sm:$0xff]  }
 0x164   :  { %798 = vmatprep.subr.bf16.mxu1 %v1812_v13  ;;  %v1889_v13 = vld [vmem:[#allocation8 + $0xf0] ss:$8 sps:$4 sm:$0xff]  }
 0x167   :  { %799 = vmatpush1.bf16.msra.mxu1 %v1810_v14  ;;  %v1894_v14 = vld [vmem:[#allocation8 + $0x104] ss:$8 sps:$4 sm:$0xff]  }
 0x168   :  { %800 = vmatprep.subr.bf16.mxu1 %v1818_v15  ;;  %v1940_v15 = vld [vmem:[#allocation10 + $0x40] sm:$0xff]  }
 0x16b   :  { %801 = vmatpush1.bf16.msra.mxu1 %v1816_v16  ;;  %v1941_v16 = vld [vmem:[#allocation10] sm:$0xff]  }
 0x16c   :  { %802 = vmatprep.subr.bf16.mxu1 %v1824_v17  ;;  %v1942_v17 = vld [vmem:[#allocation10 + $0x48] sm:$0xff]  }
 0x16f   :  { %803 = vmatpush1.bf16.msra.mxu1 %v1822_v18  ;;  %v1943_v18 = vld [vmem:[#allocation10 + $0x8] sm:$0xff]  }
 0x170   :  { %804 = vmatprep.subr.bf16.mxu1 %v1830_v19  ;;  %v1944_v19 = vld [vmem:[#allocation10 + $0x50] sm:$0xff]  }
 0x173   :  { %805 = vmatpush1.bf16.msra.mxu1 %v1828_v20  ;;  %v1945_v20 = vld [vmem:[#allocation10 + $0x10] sm:$0xff]  }
 0x174   :  { %806 = vmatprep.subr.bf16.mxu1 %v1836_v22  ;;  %v1947_v22 = vld [vmem:[#allocation10 + $0x18] sm:$0xff]  }
 0x177   :  { %807 = vmatpush1.bf16.msra.mxu1 %v1834_v23  ;;  %v1948_v23 = vld [vmem:[#allocation10 + $0x60] sm:$0xff]  }
 0x178   :  { %808 = vmatprep.subr.bf16.mxu1 %v1842_v26  ;;  %v1951_v26 = vld [vmem:[#allocation10 + $0x28] sm:$0xff]  }
 0x17b   :  { %809 = vmatpush1.bf16.msra.mxu1 %v1840_v27  ;;  %v2259_v27 = vld [vmem:[%s2298_s6] sm:$0xf] }
 0x17c   :  { %1671 = vmatprep.subr.bf16.mxu1 %v1940_v15  ;;  %v400_v29 = vrot.slane %v2259_v27, %v2246_v32  ;;  %v404_v30 = vrot.slane %v2259_v27, %v2252_v34  ;;  %v412_v33 = vrot.slane %v2259_v27, %v411_v28  ;;  %v1931_v15 = vld [vmem:[#allocation8 + $0x1d0] ss:$8 sps:$4 sm:$0xff]  }
 0x211   :  { %v320_v37 = vpop.f32.mrb[4].mxu1 }
 0x212   :  { %v321_v38 = vadd.f32 %v320_v37, %v199_v35  ;;  %v322_v39 = vpop.f32.mrb[5].mxu1 }
 0x213   :  { %v323_v40 = vadd.f32 %v322_v39, %v203_v36  ;;  %v324_v41 = vpop.f32.mrb[6].mxu1 }
 0x214   :  { %v327_v42 = vmax.f32 %v321_v38, 0.0  ;;  %v325_v43 = vpop.f32.mrb[7].mxu1 }
 0x215   :  { %v328_v44 = vmax.f32 %v323_v40, 0.0 }
 0x216   :  { %v329_v47 = vpack.c.bf16 %v327_v42, %v327_v42 }
 0x217   :  { %v330_v45 = vpack.c.bf16 %v328_v44, %v328_v44 }
 0x219   :  { %769 = vmatprep.mubr.bf16.mxu0 %v330_v45  ;;  %810 = vmatprep.mubr.bf16.mxu1 %v330_v45 }
 0x21a   :  { %770 = vmatmul.mubr.bf16.vlgmr.msra.gmra.mrb[0].mxu0 %v329_v47  ;;  %811 = vmatmul.mubr.bf16.vlgmr.msra.gmra.mrb[8].mxu1 %v329_v47 }
 0x21b   :  { %1224 = vmatpush1.bf16.msra.mxu0 %v1844_v46  ;;  %1672 = vmatpush3.bf16.msra.mxu1 %v1941_v16 }
 0x21c   :  { %1225 = vmatprep.subr.bf16.mxu0 %v1849_v48  ;;  %1673 = vmatprep.subr.bf16.mxu1 %v1942_v17  ;;  %v1936_v17 = vld [vmem:[#allocation8 + $0x1e4] ss:$8 sps:$4 sm:$0xff]  }
 0x21f   :  { %1226 = vmatpush1.bf16.msra.mxu0 %v1847_v49  ;;  %1674 = vmatpush3.bf16.msra.mxu1 %v1943_v18  ;;  %v1934_v18 = vld [vmem:[#allocation8 + $0x1e0] ss:$8 sps:$4 sm:$0xff]  }
 0x220   :  { %1227 = vmatprep.subr.bf16.mxu0 %v1852_v50  ;;  %1675 = vmatprep.subr.bf16.mxu1 %v1944_v19  ;;  %v1892_v50 = vld [vmem:[#allocation8 + $0x100] ss:$8 sps:$4 sm:$0xff]  }
 0x223   :  { %1228 = vmatpush1.bf16.msra.mxu0 %v1850_v51  ;;  %1676 = vmatpush3.bf16.msra.mxu1 %v1945_v20  ;;  %v1939_v20 = vld [vmem:[#allocation8 + $0x1f4] ss:$8 sps:$4 sm:$0xff]  }
 0x224   :  { %1229 = vmatprep.subr.bf16.mxu0 %v1855_v52  ;;  %1677 = vmatprep.subr.bf16.mxu1 %v1946_v21  ;;  %v1897_v52 = vld [vmem:[#allocation8 + $0x114] ss:$8 sps:$4 sm:$0xff]   ;;  %v1937_v21 = vld [vmem:[#allocation8 + $0x1f0] ss:$8 sps:$4 sm:$0xff]  }
 0x227   :  { %1230 = vmatpush1.bf16.msra.mxu0 %v1853_v53  ;;  %1678 = vmatpush3.bf16.msra.mxu1 %v1947_v22 }
 0x228   :  { %1231 = vmatprep.subr.bf16.mxu0 %v1858_v54  ;;  %1679 = vmatprep.subr.bf16.mxu1 %v1948_v23  ;;  %v1895_v54 = vld [vmem:[#allocation8 + $0x110] ss:$8 sps:$4 sm:$0xff]  }
 0x229   :  { %v1952_v23 = vld [vmem:[#allocation10 + $0x70] sm:$0xff]  }
 0x22b   :  { %1232 = vmatpush1.bf16.msra.mxu0 %v1856_v55  ;;  %1680 = vmatpush3.bf16.msra.mxu1 %v1949_v24  ;;  %v1900_v55 = vld [vmem:[#allocation8 + $0x124] ss:$8 sps:$4 sm:$0xff]   ;;  %v1953_v24 = vld [vmem:[#allocation10 + $0x30] sm:$0xff]  }
 0x22c   :  { %1233 = vmatprep.subr.bf16.mxu0 %v1861_v56  ;;  %1681 = vmatprep.subr.bf16.mxu1 %v1950_v25  ;;  %v1898_v56 = vld [vmem:[#allocation8 + $0x120] ss:$8 sps:$4 sm:$0xff]   ;;  %v1954_v25 = vld [vmem:[#allocation10 + $0x78] sm:$0xff]  }
 0x22f   :  { %1234 = vmatpush1.bf16.msra.mxu0 %v1859_v57  ;;  %1682 = vmatpush3.bf16.msra.mxu1 %v1951_v26  ;;  %v1903_v57 = vld [vmem:[#allocation8 + $0x134] ss:$8 sps:$4 sm:$0xff]  }
 0x230   :  { %1235 = vmatprep.subr.bf16.mxu0 %v1864_v58  ;;  %v1901_v58 = vld [vmem:[#allocation8 + $0x130] ss:$8 sps:$4 sm:$0xff]   ;;  %1683 = vmatprep.subr.bf16.mxu1 %v1952_v23 }
 0x231   :  { %v1955_v26 = vld [vmem:[#allocation10 + $0x38] sm:$0xff]  }
 0x233   :  { %1236 = vmatpush1.bf16.msra.mxu0 %v1862_v59  ;;  %v1906_v59 = vld [vmem:[#allocation8 + $0x144] ss:$8 sps:$4 sm:$0xff]   ;;  %1684 = vmatpush3.bf16.msra.mxu1 %v1953_v24 }
 0x234   :  { %1237 = vmatprep.subr.bf16.mxu0 %v1867_v60  ;;  %v1904_v60 = vld [vmem:[#allocation8 + $0x140] ss:$8 sps:$4 sm:$0xff]   ;;  %1685 = vmatprep.subr.bf16.mxu1 %v1954_v25 }
 0x237   :  { %1238 = vmatpush1.bf16.msra.mxu0 %v1865_v61  ;;  %v1909_v61 = vld [vmem:[#allocation8 + $0x154] ss:$8 sps:$4 sm:$0xff]   ;;  %1686 = vmatpush3.bf16.msra.mxu1 %v1955_v26 }
 0x238   :  { %1239 = vmatprep.subr.bf16.mxu0 %v1870_v62  ;;  %v1907_v62 = vld [vmem:[#allocation8 + $0x150] ss:$8 sps:$4 sm:$0xff]  }
 0x23b   :  { %1240 = vmatpush1.bf16.msra.mxu0 %v1868_v63  ;;  %v1912_v63 = vld [vmem:[#allocation8 + $0x164] ss:$8 sps:$4 sm:$0xff]  }
 0x23c   :  { %1241 = vmatprep.subr.bf16.mxu0 %v1873_v0  ;;  %v1910_v0 = vld [vmem:[#allocation8 + $0x160] ss:$8 sps:$4 sm:$0xff]  }
 0x23f   :  { %1242 = vmatpush1.bf16.msra.mxu0 %v1871_v1  ;;  %v1915_v1 = vld [vmem:[#allocation8 + $0x174] ss:$8 sps:$4 sm:$0xff]  }
 0x240   :  { %1243 = vmatprep.subr.bf16.mxu0 %v1876_v2  ;;  %v1913_v2 = vld [vmem:[#allocation8 + $0x170] ss:$8 sps:$4 sm:$0xff]  }
 0x243   :  { %1244 = vmatpush1.bf16.msra.mxu0 %v1874_v3  ;;  %v1918_v3 = vld [vmem:[#allocation8 + $0x184] ss:$8 sps:$4 sm:$0xff]  }
 0x244   :  { %1245 = vmatprep.subr.bf16.mxu0 %v1879_v4  ;;  %v1916_v4 = vld [vmem:[#allocation8 + $0x180] ss:$8 sps:$4 sm:$0xff]  }
 0x247   :  { %1246 = vmatpush1.bf16.msra.mxu0 %v1877_v5  ;;  %v1921_v5 = vld [vmem:[#allocation8 + $0x194] ss:$8 sps:$4 sm:$0xff]  }
 0x248   :  { %1247 = vmatprep.subr.bf16.mxu0 %v1882_v6  ;;  %v1919_v6 = vld [vmem:[#allocation8 + $0x190] ss:$8 sps:$4 sm:$0xff]  }
 0x24b   :  { %1248 = vmatpush1.bf16.msra.mxu0 %v1880_v7  ;;  %v1924_v7 = vld [vmem:[#allocation8 + $0x1a4] ss:$8 sps:$4 sm:$0xff]  }
 0x24c   :  { %1249 = vmatprep.subr.bf16.mxu0 %v1885_v8  ;;  %v1922_v8 = vld [vmem:[#allocation8 + $0x1a0] ss:$8 sps:$4 sm:$0xff]  }
 0x24f   :  { %1250 = vmatpush1.bf16.msra.mxu0 %v1883_v9  ;;  %v1927_v9 = vld [vmem:[#allocation8 + $0x1b4] ss:$8 sps:$4 sm:$0xff]  }
 0x250   :  { %1251 = vmatprep.subr.bf16.mxu0 %v1888_v10  ;;  %v1925_v10 = vld [vmem:[#allocation8 + $0x1b0] ss:$8 sps:$4 sm:$0xff]  }
 0x253   :  { %1252 = vmatpush1.bf16.msra.mxu0 %v1886_v11  ;;  %v1930_v11 = vld [vmem:[#allocation8 + $0x1c4] ss:$8 sps:$4 sm:$0xff]  }
 0x254   :  { %1253 = vmatprep.subr.bf16.mxu0 %v1891_v12  ;;  %v1928_v12 = vld [vmem:[#allocation8 + $0x1c0] ss:$8 sps:$4 sm:$0xff]  }
 0x257   :  { %1254 = vmatpush1.bf16.msra.mxu0 %v1889_v13  ;;  %v407_v13 = vsub.s32 2, %v2243_v31 }
 0x258   :  { %1264 = vmatprep.subr.bf16.mxu0 %v1894_v14  ;;  %v1933_v14 = vld [vmem:[#allocation8 + $0x1d4] ss:$8 sps:$4 sm:$0xff]  }
 0x259   :  { %v408_v16 = vrot.slane %v2259_v27, %v407_v13  ;;  %v891_v27 = vld [vmem:[%s2300_s8] sm:$0x3]  ;;  %s2110_s8 = smov [#allocation11]  }
 0x25a   :  { %v896_v28 = vrot.slane %v891_v27, %v2246_v32  ;;  %s1492_s1 = sshll.u32 %s2110_s8, 4  ;;  %s1493_s1 = int_to_ptr.vmem [resolvable:$true] %s1492_s1 }
 0x25b   :  { %s2066_s15 = scalar_lea.vmem %s1493_s1, 128  ;;  %p2071_p13 = scmp.lt.s32.totalorder %s1493_s1, %s1493_s1 }
 0x25c   :  { %p2067_p12 = scmp.ne.s32.totalorder %s1493_s1, %s2066_s15  ;;  %p2072_p0 = scmp.lt.s32.totalorder %s2066_s15, %s2066_s15 }
 0x25e   :  { %p2073_p1 = por %p2072_p0, %p2071_p13 }
 0x260   :  { %p2074_p2 = pnand %p2073_p1, %p2067_p12 }
 0x2ed   :  { %v771_v35 = vpop.f32.mrb[0].mxu0  ;;  %v2267_v36 = vpop.f32.mrb[8].mxu1 }
 0x2ee   :  { %v772_v37 = vadd.f32 %v771_v35, %v400_v29  ;;  %v773_v38 = vpop.f32.mrb[1].mxu0  ;;  %v814_v39 = vpop.f32.mrb[9].mxu1  ;;  %v813_v19 = vadd.f32 %v2267_v36, %v408_v16  ;;  %v900_v29 = vrot.slane %v891_v27, %v2252_v34 }
 0x2ef   :  { %v774_v40 = vadd.f32 %v773_v38, %v404_v30  ;;  %v815_v41 = vadd.f32 %v814_v39, %v412_v33  ;;  %v775_v42 = vpop.f32.mrb[2].mxu0  ;;  %v816_v43 = vpop.f32.mrb[10].mxu1 }
 0x2f0   :  { %v819_v44 = vmax.f32 %v772_v37, 0.0  ;;  %v776_v45 = vpop.f32.mrb[3].mxu0  ;;  %v817_v46 = vpop.f32.mrb[11].mxu1  ;;  %v821_v22 = vmax.f32 %v813_v19, 0.0 }
 0x2f1   :  { %v820_v47 = vmax.f32 %v774_v40, 0.0  ;;  %v822_v48 = vmax.f32 %v815_v41, 0.0 }
 0x2f2   :  { %v823_v51 = vpack.c.bf16 %v819_v44, %v819_v44  ;;  %v825_v31 = vpack.c.bf16 %v821_v22, %v821_v22  ;;  %v1651_v44 = vld [vmem:[%s2302_s10] ss:$0 sm:$0xff] }
 0x2f3   :  { %v824_v49 = vpack.c.bf16 %v820_v47, %v820_v47  ;;  %v826_v53 = vpack.c.bf16 %v822_v48, %v822_v48 }
 0x2f5   :  { %1255 = vmatprep.mubr.bf16.mxu0 %v824_v49 }
 0x2f6   :  { %1256 = vmatmul.mubr.bf16.vlgmr.msra.gmra.mrb[4].mxu0 %v823_v51 }
 0x2f7   :  { %1265 = vmatpush1.bf16.msra.mxu0 %v1892_v50  ;;  %1296 = vmatprep.mubr.bf16.mxu0 %v826_v53 }
 0x2f8   :  { %1266 = vmatprep.subr.bf16.mxu0 %v1897_v52 }
 0x2fb   :  { %1267 = vmatpush1.bf16.msra.mxu0 %v1895_v54 }
 0x2fc   :  { %1268 = vmatprep.subr.bf16.mxu0 %v1900_v55 }
 0x2ff   :  { %1269 = vmatpush1.bf16.msra.mxu0 %v1898_v56 }
 0x300   :  { %1270 = vmatprep.subr.bf16.mxu0 %v1903_v57 }
 0x303   :  { %1271 = vmatpush1.bf16.msra.mxu0 %v1901_v58 }
 0x304   :  { %1272 = vmatprep.subr.bf16.mxu0 %v1906_v59 }
 0x307   :  { %1273 = vmatpush1.bf16.msra.mxu0 %v1904_v60 }
 0x308   :  { %1274 = vmatprep.subr.bf16.mxu0 %v1909_v61 }
 0x30b   :  { %1275 = vmatpush1.bf16.msra.mxu0 %v1907_v62 }
 0x30c   :  { %1276 = vmatprep.subr.bf16.mxu0 %v1912_v63 }
 0x30f   :  { %1277 = vmatpush1.bf16.msra.mxu0 %v1910_v0 }
 0x310   :  { %1278 = vmatprep.subr.bf16.mxu0 %v1915_v1 }
 0x313   :  { %1279 = vmatpush1.bf16.msra.mxu0 %v1913_v2 }
 0x314   :  { %1280 = vmatprep.subr.bf16.mxu0 %v1918_v3 }
 0x317   :  { %1281 = vmatpush1.bf16.msra.mxu0 %v1916_v4 }
 0x318   :  { %1282 = vmatprep.subr.bf16.mxu0 %v1921_v5 }
 0x31b   :  { %1283 = vmatpush1.bf16.msra.mxu0 %v1919_v6 }
 0x31c   :  { %1284 = vmatprep.subr.bf16.mxu0 %v1924_v7 }
 0x31f   :  { %1285 = vmatpush1.bf16.msra.mxu0 %v1922_v8 }
 0x320   :  { %1286 = vmatprep.subr.bf16.mxu0 %v1927_v9 }
 0x323   :  { %1287 = vmatpush1.bf16.msra.mxu0 %v1925_v10 }
 0x324   :  { %1288 = vmatprep.subr.bf16.mxu0 %v1930_v11 }
 0x327   :  { %1289 = vmatpush1.bf16.msra.mxu0 %v1928_v12 }
 0x328   :  { %1290 = vmatprep.subr.bf16.mxu0 %v1933_v14 }
 0x32b   :  { %1291 = vmatpush1.bf16.msra.mxu0 %v1931_v15 }
 0x32c   :  { %1292 = vmatprep.subr.bf16.mxu0 %v1936_v17 }
 0x32f   :  { %1293 = vmatpush1.bf16.msra.mxu0 %v1934_v18 }
 0x330   :  { %1294 = vmatprep.subr.bf16.mxu0 %v1939_v20 }
 0x333   :  { %1295 = vmatpush1.bf16.msra.mxu0 %v1937_v21 }
 0x336   :  { %1297 = vmatmul.mubr.bf16.vlgmr.msra.gmra.mrb[4].mxu0 %v825_v31 }
 0x409   :  { %v1298_v30 = vpop.f32.mrb[4].mxu0 }
 0x40a   :  { %v1701_v33 = vadd.f32 %v1298_v30, %v896_v28  ;;  %v1300_v35 = vpop.f32.mrb[5].mxu0 }
 0x40b   :  { %v1702_v36 = vadd.f32 %v1300_v35, %v900_v29  ;;  %v1302_v37 = vpop.f32.mrb[6].mxu0 }
 0x40c   :  { %v1305_v38 = vmax.f32 %v1701_v33, 0.0  ;;  %v1303_v39 = vpop.f32.mrb[7].mxu0 }
 0x40d   :  { %v1306_v40 = vmax.f32 %v1702_v36, 0.0 }
 0x40e   :  { %v1307_v42 = vpack.c.bf16 %v1305_v38, %v1305_v38 }
 0x40f   :  { %v1308_v41 = vpack.c.bf16 %v1306_v40, %v1306_v40 }
 0x411   :  { %1476 = vmatprep.mubr.bf16.mxu1 %v1308_v41 }
 0x412   :  { %1477 = vmatmul.mubr.bf16.vlgmr.msra.gmra.mrb[12].mxu1 %v1307_v42 }
 0x4e5   :  { %v1687_v43 = vpop.f32.mrb[12].mxu1 }
 0x4e6   :  { %v1688_v32 = vpop.f32.mrb[13].mxu1 }
 0x4e7   :  { %v1689_v45 = vadd.f32 %v1688_v32, %v1687_v43  ;;  %v1690_v34 = vpop.f32.mrb[14].mxu1 }
 0x4e8   :  { %v1691_v46 = vpop.f32.mrb[15].mxu1 }
 0x4e9   :  { %v1479_v47 = vadd.f32 %v1689_v45, %v1651_v44 }
 0x4eb   :  { %v1484_v48 = vmax.f32 %v1479_v47, 0.0 }
 0x4ed   :  { %1485 = vst [vmem:[#allocation11] sm:$0xff] %v1484_v48 }
 0x4ee   :  { %2077 = shalt.err (!%p2074_p2)
}
 0x4ef   :  { %s2078_s10 = scalar_lea.hbm %s2303_s11, 128 }
 0x4f0   :  { %p2079_p3 = scmp.ne.s32.totalorder %s2303_s11, %s2078_s10  ;;  %p2082_p4 = scmp.lt.u32.totalorder %s2078_s10, %s2303_s11 }
 0x4f2   :  { %p2084_p5 = pnand %p2082_p4, %p2079_p3 }
 0x4f4   :  { %2087 = shalt.err (!%p2084_p5)
}
 0x4f5   :  { %1495 = dma.vmem_to_hbm [thread:$0]  %s1493_s1, 128, %s2303_s11, [#allocation4]  }
 0x4f6   :  { %2094 = dma.done.wait [#allocation4], 128  }
 0x4f7   :  { %2095 = vsyncadd [#allocation4], 4294967168 }
 0x4f8   :  { %1499 = vsyncpa [#allocation3], 1 }
 0x4f9   :  { %1500 = vsyncpa [#allocation6], 1 }
 0x4fa   :  { %1501 = vsyncpa [#allocation9], 1 }
 0x4fb   :  { %1502 = vsyncpa [#allocation4], 1 }

</bundles_post_ra>
